<compile_context>
chip_gen: v6e
topology: v6e:2x2x1
jax: 0.10.0
libtpu: 0.0.40
codegen_flags: <defaults>
</compile_context>

<pallas_src>
import jax
import jax.numpy as jnp
from jax import lax
from jax.experimental import pallas as pl
from jax.experimental.pallas import tpu as pltpu

HEAD_PAD = 8  # heads padded to 8 sublanes; row 0 = magnetic, row 1 = topological


def _mlp_kernel(x_ref,
                w1_ref, b1_ref,
                w2_ref, b2_ref,
                w3_ref, b3_ref,
                wh_t_ref, bh_t_ref,
                out_ref):
    """One batch tile: 3x (Linear+ReLU, eval-BN folded into weights) + fused,
    transposed 2-head output of shape (8, TB)."""
    cdt = w1_ref.dtype  # bf16 MXU inputs; accumulation stays f32

    h = x_ref[...].astype(cdt)  # in-VMEM f32 -> bf16 cast (no wrapper pass)
    h = jnp.dot(h, w1_ref[...], preferred_element_type=jnp.float32)
    h = jnp.maximum(h + b1_ref[...], 0.0).astype(cdt)

    h = jnp.dot(h, w2_ref[...], preferred_element_type=jnp.float32)
    h = jnp.maximum(h + b2_ref[...], 0.0).astype(cdt)

    h = jnp.dot(h, w3_ref[...], preferred_element_type=jnp.float32)
    h = jnp.maximum(h + b3_ref[...], 0.0).astype(cdt)

    # Transposed fused heads: (8, 64) contracted with (TB, 64) over the 64-dim
    # -> (8, TB). Lane dim = TB (multiple of 128) => unmasked full-width store.
    out_t = lax.dot_general(wh_t_ref[...], h,
                            (((1,), (1,)), ((), ())),
                            preferred_element_type=jnp.float32)
    out_ref[...] = out_t + bh_t_ref[...]


def _round_up(n, m):
    return ((n + m - 1) // m) * m


def _select_tb(B):
    """Batch tile: multiple of 128, <= 2048, dividing the 128-aligned padded
    batch; prefers >= 2 grid steps so both v7x TensorCores get work and the
    per-step working set (<~3 MB double-buffered) stays far under VMEM."""
    b128 = _round_up(max(B, 1), 128)
    for tb in (2048, 1024, 512, 384, 256, 128):
        if tb * 2 <= b128 and b128 % tb == 0:
            return tb
    return 128


def _const_spec(a):
    """Full-array block with a constant block index: fetched once, stays
    VMEM-resident. Single-buffered (no second buffer is ever needed)."""
    idx_map = lambda i, _nd=a.ndim: (0,) * _nd
    try:
        return pl.BlockSpec(a.shape, idx_map, pipeline_mode=pl.Buffered(1))
    except Exception:  # older JAX without pipeline_mode / Buffered
        return pl.BlockSpec(a.shape, idx_map)


def fold_params(params, compute_dtype=jnp.bfloat16):
    """Fold eval-mode BatchNorm affines into the following Linear layer, fuse
    the two heads and transpose them to (HEAD_PAD, hidden[-1]). Weights cast to
    `compute_dtype`, biases kept f32."""
    w1, b1 = params["w1"], params["b1"]

    # BN_i sits between relu(layer_i) and layer_{i+1}:
    #   (a * s + t) @ W = a @ (diag(s) @ W) + t @ W
    w2f = params["s1"].T * params["w2"]
    b2f = params["b2"] + params["t1"] @ params["w2"]

    w3f = params["s2"].T * params["w3"]
    b3f = params["b3"] + params["t2"] @ params["w3"]

    whf = params["s3"].T * params["wh"]
    bhf = params["bh"] + params["t3"] @ params["wh"]

    n_heads = whf.shape[1]
    wh_t = jnp.pad(whf, ((0, 0), (0, HEAD_PAD - n_heads))).T   # (8, hidden[-1])
    bh_t = jnp.pad(bhf, ((0, 0), (0, HEAD_PAD - n_heads))).T   # (8, 1)

    return dict(
        w1=w1.astype(compute_dtype), b1=b1.astype(jnp.float32),
        w2=w2f.astype(compute_dtype), b2=b2f.astype(jnp.float32),
        w3=w3f.astype(compute_dtype), b3=b3f.astype(jnp.float32),
        wh_t=wh_t.astype(compute_dtype), bh_t=bh_t.astype(jnp.float32),
    )


def magnetic_topological_forward(x, folded):
    """x: (B, input_dim) f32; folded: output of fold_params.
    Returns (magnetic, topological), each of shape (B,)."""
    B, D = x.shape

    TB = _select_tb(B)
    B_pad = _round_up(B, TB)
    if B_pad != B:
        x = jnp.pad(x, ((0, B_pad - B), (0, 0)))

    operands = (x,
                folded["w1"], folded["b1"],
                folded["w2"], folded["b2"],
                folded["w3"], folded["b3"],
                folded["wh_t"], folded["bh_t"])

    out = pl.pallas_call(
        _mlp_kernel,
        out_shape=jax.ShapeDtypeStruct((HEAD_PAD, B_pad), jnp.float32),
        grid=(B_pad // TB,),
        in_specs=[pl.BlockSpec((TB, D), lambda i: (i, 0))]
                 + [_const_spec(a) for a in operands[1:]],
        out_specs=pl.BlockSpec((HEAD_PAD, TB), lambda i: (0, i)),
        compiler_params=pltpu.CompilerParams(
            dimension_semantics=("parallel",),           # megacore sharding on v7x
            vmem_limit_bytes=32 * 1024 * 1024),           # safe on v5e/v6e/v7x
    )(*operands)

    magnetic = jnp.squeeze(out[0, :B])
    topological = jnp.squeeze(out[1, :B])
    return magnetic, topological


def init_params(key, input_dim, hidden_dims=(256, 128, 64)):
    """Deterministic synthetic parameters (PyTorch-like uniform fan-in init).
    BatchNorm1d eval stats expressed as per-feature scale/shift (s_i, t_i)."""
    params = {}
    dims = [input_dim] + list(hidden_dims)
    keys = jax.random.split(key, 4 * len(hidden_dims) + 2)
    ki = 0
    for li in range(len(hidden_dims)):
        fan_in, fan_out = dims[li], dims[li + 1]
        bound = 1.0 / (fan_in ** 0.5)
        params[f"w{li+1}"] = jax.random.uniform(
            keys[ki], (fan_in, fan_out), jnp.float32, -bound, bound); ki += 1
        params[f"b{li+1}"] = jax.random.uniform(
            keys[ki], (1, fan_out), jnp.float32, -bound, bound); ki += 1
        # BatchNorm1d (eval): scale = gamma / sqrt(running_var + eps),
        # shift = beta - running_mean * scale. Fresh stats: mean=0, var=1.
        eps = 1e-5
        gamma = 1.0 + 0.1 * jax.random.normal(keys[ki], (1, fan_out), jnp.float32); ki += 1
        beta = 0.1 * jax.random.normal(keys[ki], (1, fan_out), jnp.float32); ki += 1
        scale = gamma / jnp.sqrt(1.0 + eps)
        shift = beta - 0.0 * scale
        params[f"s{li+1}"] = scale
        params[f"t{li+1}"] = shift
    # heads: magnetic (col 0) and topological (col 1), fused as (hidden[-1], 2)
    fan_in = hidden_dims[-1]
    bound = 1.0 / (fan_in ** 0.5)
    params["wh"] = jax.random.uniform(
        keys[ki], (fan_in, 2), jnp.float32, -bound, bound); ki += 1
    params["bh"] = jax.random.uniform(
        keys[ki], (1, 2), jnp.float32, -bound, bound); ki += 1
    return params


def _reference_forward(x, params):
    """Pure-JAX f32 reference (unfolded BN) for correctness checking."""
    h = x
    for li in range(3):
        h = h @ params[f"w{li+1}"] + params[f"b{li+1}"]
        h = jnp.maximum(h, 0.0)
        h = h * params[f"s{li+1}"] + params[f"t{li+1}"]
    out = h @ params["wh"] + params["bh"]
    return out[:, 0].squeeze(), out[:, 1].squeeze()


if __name__ == "__main__":
    key = jax.random.PRNGKey(0)
    k_param, k_x = jax.random.split(key)

    batch = 8
    input_dim = 32
    params = init_params(k_param, input_dim)
    x = jax.random.normal(k_x, (batch, input_dim), jnp.float32)

    folded = fold_params(params, compute_dtype=jnp.bfloat16)
    mag, topo = magnetic_topological_forward(x, folded)
    jax.block_until_ready((mag, topo))

    mag_ref, topo_ref = _reference_forward(x, params)
    assert mag.shape == (batch,) and topo.shape == (batch,)
    # bf16 weights/activations with f32 accumulate -> looser tolerance vs f32 ref.
    assert jnp.allclose(mag, mag_ref, atol=2e-2, rtol=2e-2)
    assert jnp.allclose(topo, topo_ref, atol=2e-2, rtol=2e-2)

    print("KERNEL_OK")
</pallas_src>

<mosaic_0001>
module attributes {stable_mosaic.version = 11 : i64} {
  func.func @_mlp_kernel(%arg0: i32, %arg1: memref<128x32xf32, #tpu.memory_space<vmem>>, %arg2: memref<32x256xbf16, #tpu.memory_space<vmem>>, %arg3: memref<1x256xf32, #tpu.memory_space<vmem>>, %arg4: memref<256x128xbf16, #tpu.memory_space<vmem>>, %arg5: memref<1x128xf32, #tpu.memory_space<vmem>>, %arg6: memref<128x64xbf16, #tpu.memory_space<vmem>>, %arg7: memref<1x64xf32, #tpu.memory_space<vmem>>, %arg8: memref<8x64xbf16, #tpu.memory_space<vmem>>, %arg9: memref<8x1xf32, #tpu.memory_space<vmem>>, %arg10: memref<8x128xf32, #tpu.memory_space<vmem>>) attributes {dimension_semantics = [#tpu.dimension_semantics<parallel>], iteration_bounds = array<i64: 1>, scalar_prefetch = 0 : i64, scratch_operands = 0 : i64, tpu.core_type = #tpu.core_type<tc>, window_params = [{transform_indices = @transform_0, window_bounds = array<i64: 128, 32>}, {pipeline_mode = #tpu.pipeline_mode<synchronous>, transform_indices = @transform_1, window_bounds = array<i64: 32, 256>}, {pipeline_mode = #tpu.pipeline_mode<synchronous>, transform_indices = @transform_2, window_bounds = array<i64: 1, 256>}, {pipeline_mode = #tpu.pipeline_mode<synchronous>, transform_indices = @transform_3, window_bounds = array<i64: 256, 128>}, {pipeline_mode = #tpu.pipeline_mode<synchronous>, transform_indices = @transform_4, window_bounds = array<i64: 1, 128>}, {pipeline_mode = #tpu.pipeline_mode<synchronous>, transform_indices = @transform_5, window_bounds = array<i64: 128, 64>}, {pipeline_mode = #tpu.pipeline_mode<synchronous>, transform_indices = @transform_6, window_bounds = array<i64: 1, 64>}, {pipeline_mode = #tpu.pipeline_mode<synchronous>, transform_indices = @transform_7, window_bounds = array<i64: 8, 64>}, {pipeline_mode = #tpu.pipeline_mode<synchronous>, transform_indices = @transform_8, window_bounds = array<i64: 8, 1>}, {transform_indices = @transform_9, window_bounds = array<i64: 8, 128>}]} {
    %c0 = arith.constant 0 : index
    %c0_0 = arith.constant 0 : index
    %0 = vector.load %arg1[%c0, %c0_0] : memref<128x32xf32, #tpu.memory_space<vmem>>, vector<128x32xf32>
    %1 = arith.truncf %0 : vector<128x32xf32> to vector<128x32xbf16>
    %c0_1 = arith.constant 0 : index
    %c0_2 = arith.constant 0 : index
    %2 = vector.load %arg2[%c0_1, %c0_2] : memref<32x256xbf16, #tpu.memory_space<vmem>>, vector<32x256xbf16>
    %cst = arith.constant dense<0.000000e+00> : vector<128x256xf32>
    %3 = tpu.matmul %1, %2, %cst {dimension_numbers = #tpu.dot_dimension_numbers<[1], [0], [0], [1], [0, 0, 1, 1], [], []>} : vector<128x32xbf16>, vector<32x256xbf16>, vector<128x256xf32> -> vector<128x256xf32>
    %c0_3 = arith.constant 0 : index
    %c0_4 = arith.constant 0 : index
    %4 = vector.load %arg3[%c0_3, %c0_4] : memref<1x256xf32, #tpu.memory_space<vmem>>, vector<1x256xf32>
    %5 = vector.broadcast %4 : vector<1x256xf32> to vector<128x256xf32>
    %6 = arith.addf %3, %5 : vector<128x256xf32>
    %cst_5 = arith.constant 0.000000e+00 : f32
    %7 = vector.broadcast %cst_5 : f32 to vector<128x256xf32>
    %8 = arith.maximumf %6, %7 : vector<128x256xf32>
    %9 = arith.truncf %8 : vector<128x256xf32> to vector<128x256xbf16>
    %c0_6 = arith.constant 0 : index
    %c0_7 = arith.constant 0 : index
    %10 = vector.load %arg4[%c0_6, %c0_7] : memref<256x128xbf16, #tpu.memory_space<vmem>>, vector<256x128xbf16>
    %cst_8 = arith.constant dense<0.000000e+00> : vector<128x128xf32>
    %11 = tpu.matmul %9, %10, %cst_8 {dimension_numbers = #tpu.dot_dimension_numbers<[1], [0], [0], [1], [0, 0, 1, 1], [], []>} : vector<128x256xbf16>, vector<256x128xbf16>, vector<128x128xf32> -> vector<128x128xf32>
    %c0_9 = arith.constant 0 : index
    %c0_10 = arith.constant 0 : index
    %12 = vector.load %arg5[%c0_9, %c0_10] : memref<1x128xf32, #tpu.memory_space<vmem>>, vector<1x128xf32>
    %13 = vector.broadcast %12 : vector<1x128xf32> to vector<128x128xf32>
    %14 = arith.addf %11, %13 : vector<128x128xf32>
    %cst_11 = arith.constant 0.000000e+00 : f32
    %15 = vector.broadcast %cst_11 : f32 to vector<128x128xf32>
    %16 = arith.maximumf %14, %15 : vector<128x128xf32>
    %17 = arith.truncf %16 : vector<128x128xf32> to vector<128x128xbf16>
    %c0_12 = arith.constant 0 : index
    %c0_13 = arith.constant 0 : index
    %18 = vector.load %arg6[%c0_12, %c0_13] : memref<128x64xbf16, #tpu.memory_space<vmem>>, vector<128x64xbf16>
    %cst_14 = arith.constant dense<0.000000e+00> : vector<128x64xf32>
    %19 = tpu.matmul %17, %18, %cst_14 {dimension_numbers = #tpu.dot_dimension_numbers<[1], [0], [0], [1], [0, 0, 1, 1], [], []>} : vector<128x128xbf16>, vector<128x64xbf16>, vector<128x64xf32> -> vector<128x64xf32>
    %c0_15 = arith.constant 0 : index
    %c0_16 = arith.constant 0 : index
    %20 = vector.load %arg7[%c0_15, %c0_16] : memref<1x64xf32, #tpu.memory_space<vmem>>, vector<1x64xf32>
    %21 = vector.broadcast %20 : vector<1x64xf32> to vector<128x64xf32>
    %22 = arith.addf %19, %21 : vector<128x64xf32>
    %cst_17 = arith.constant 0.000000e+00 : f32
    %23 = vector.broadcast %cst_17 : f32 to vector<128x64xf32>
    %24 = arith.maximumf %22, %23 : vector<128x64xf32>
    %25 = arith.truncf %24 : vector<128x64xf32> to vector<128x64xbf16>
    %c0_18 = arith.constant 0 : index
    %c0_19 = arith.constant 0 : index
    %26 = vector.load %arg8[%c0_18, %c0_19] : memref<8x64xbf16, #tpu.memory_space<vmem>>, vector<8x64xbf16>
    %cst_20 = arith.constant dense<0.000000e+00> : vector<8x128xf32>
    %27 = tpu.matmul %26, %25, %cst_20 {dimension_numbers = #tpu.dot_dimension_numbers<[1], [1], [0], [0], [0, 0, 1, 0], [], []>} : vector<8x64xbf16>, vector<128x64xbf16>, vector<8x128xf32> -> vector<8x128xf32>
    %c0_21 = arith.constant 0 : index
    %c0_22 = arith.constant 0 : index
    %28 = vector.load %arg9[%c0_21, %c0_22] : memref<8x1xf32, #tpu.memory_space<vmem>>, vector<8x1xf32>
    %29 = vector.broadcast %28 : vector<8x1xf32> to vector<8x128xf32>
    %30 = arith.addf %27, %29 : vector<8x128xf32>
    %c0_23 = arith.constant 0 : index
    %c0_24 = arith.constant 0 : index
    %31 = vector.load %arg10[%c0_23, %c0_24] : memref<8x128xf32, #tpu.memory_space<vmem>>, vector<8x128xf32>
    tpu.vector_store %arg10[%c0_23, %c0_24], %30 {strides = array<i32>} : memref<8x128xf32, #tpu.memory_space<vmem>>, vector<8x128xf32>,
    return
  }
  func.func @transform_0(%arg0: i32) -> (i32, i32) {
    %c0_i32 = arith.constant 0 : i32
    %c0_i32_0 = arith.constant 0 : i32
    return %arg0, %c0_i32 : i32, i32
  }
  func.func @transform_1(%arg0: i32) -> (i32, i32) {
    %c0_i32 = arith.constant 0 : i32
    %c0_i32_0 = arith.constant 0 : i32
    %c0_i32_1 = arith.constant 0 : i32
    return %c0_i32, %c0_i32_0 : i32, i32
  }
  func.func @transform_2(%arg0: i32) -> (i32, i32) {
    %c0_i32 = arith.constant 0 : i32
    %c0_i32_0 = arith.constant 0 : i32
    %c0_i32_1 = arith.constant 0 : i32
    return %c0_i32, %c0_i32_0 : i32, i32
  }
  func.func @transform_3(%arg0: i32) -> (i32, i32) {
    %c0_i32 = arith.constant 0 : i32
    %c0_i32_0 = arith.constant 0 : i32
    %c0_i32_1 = arith.constant 0 : i32
    return %c0_i32, %c0_i32_0 : i32, i32
  }
  func.func @transform_4(%arg0: i32) -> (i32, i32) {
    %c0_i32 = arith.constant 0 : i32
    %c0_i32_0 = arith.constant 0 : i32
    %c0_i32_1 = arith.constant 0 : i32
    return %c0_i32, %c0_i32_0 : i32, i32
  }
  func.func @transform_5(%arg0: i32) -> (i32, i32) {
    %c0_i32 = arith.constant 0 : i32
    %c0_i32_0 = arith.constant 0 : i32
    %c0_i32_1 = arith.constant 0 : i32
    return %c0_i32, %c0_i32_0 : i32, i32
  }
  func.func @transform_6(%arg0: i32) -> (i32, i32) {
    %c0_i32 = arith.constant 0 : i32
    %c0_i32_0 = arith.constant 0 : i32
    %c0_i32_1 = arith.constant 0 : i32
    return %c0_i32, %c0_i32_0 : i32, i32
  }
  func.func @transform_7(%arg0: i32) -> (i32, i32) {
    %c0_i32 = arith.constant 0 : i32
    %c0_i32_0 = arith.constant 0 : i32
    %c0_i32_1 = arith.constant 0 : i32
    return %c0_i32, %c0_i32_0 : i32, i32
  }
  func.func @transform_8(%arg0: i32) -> (i32, i32) {
    %c0_i32 = arith.constant 0 : i32
    %c0_i32_0 = arith.constant 0 : i32
    %c0_i32_1 = arith.constant 0 : i32
    return %c0_i32, %c0_i32_0 : i32, i32
  }
  func.func @transform_9(%arg0: i32) -> (i32, i32) {
    %c0_i32 = arith.constant 0 : i32
    %c0_i32_0 = arith.constant 0 : i32
    return %c0_i32, %arg0 : i32, i32
  }
}

</mosaic_0001>

<bundles_post_ra>
// kernel: tpu_custom_call.1
= control target key start
LH: loop header
LB: loop body
LE: loop exit
PB: predicated region body
PF: predicated region fallthrough
CT: control target
= control target key end

     0   :  { %v1055_v2 = vmov 0   ;;  %vm94_vm0 = vcmask 261120   ;;  %s1372_s0 = inlined_call_operand.vmem [shape: f32[128,32], index: 0, kind: input, shape index: {}]   ;;  %s1373_s1 = inlined_call_operand.vmem [shape: bf16[32,256], index: 1, kind: input, shape index: {}]   ;;  %s1374_s2 = inlined_call_operand.vmem [shape: f32[1,256], index: 2, kind: input, shape index: {}]   ;;  %s1375_s3 = inlined_call_operand.vmem [shape: bf16[256,128], index: 3, kind: input, shape index: {}]   ;;  %s1376_s4 = inlined_call_operand.vmem [shape: f32[1,128], index: 4, kind: input, shape index: {}]   ;;  %s1377_s5 = inlined_call_operand.vmem [shape: bf16[128,64], index: 5, kind: input, shape index: {}]   ;;  %s1378_s6 = inlined_call_operand.vmem [shape: f32[1,64], index: 6, kind: input, shape index: {}]   ;;  %s1379_s7 = inlined_call_operand.vmem [shape: bf16[8,64], index: 7, kind: input, shape index: {}]   ;;  %s1380_s8 = inlined_call_operand.vmem [shape: f32[8,1], index: 8, kind: input, shape index: {}]   ;;  %s1381_s9 = inlined_call_operand.hbm [shape: f32[8,128], index: 9, kind: output, shape index: {}]  }
   0x1   :  { %v1003_v0 = vld [vmem:[%s1373_s1 + $0x14] ss:$8 sps:$4 sm:$0xff]   ;;  %v1005_v1 = vld [vmem:[%s1373_s1 + $0x10] ss:$8 sps:$4 sm:$0xff]   ;;  %151 = vmatprep.mubr.bf16.mxu0 %v1055_v2  ;;  %1002 = vset.pattern.permute.xlu0 %v1055_v2  ;;  %v1006_v3 = vld [vmem:[%s1373_s1 + $0x4] ss:$8 sps:$4 sm:$0xff]  }
   0x2   :  { %131 = vmatprep.subr.bf16.mxu0 %v1003_v0  ;;  %v1008_v4 = vld [vmem:[%s1373_s1] ss:$8 sps:$4 sm:$0xff]   ;;  %v1009_v8 = vld [vmem:[%s1375_s3 + $0x78] sm:$0xff]   ;;  %v36_v9 = vld [vmem:[%s1372_s0 + $0x10] sm:$0xff] }
   0x3   :  { %132 = vmatpush1.bf16.msra.mxu0 %v1005_v1  ;;  %v34_v5 = vld [vmem:[%s1372_s0] sm:$0xff]  ;;  %v35_v6 = vld [vmem:[%s1372_s0 + $0x8] sm:$0xff]  ;;  %v37_v10 = vld [vmem:[%s1372_s0 + $0x18] sm:$0xff]  ;;  %857 = vmatprep.subr.bf16.mxu1 %v1009_v8 }
   0x4   :  { %133 = vmatprep.subr.bf16.mxu0 %v1006_v3  ;;  %v50_v7 = vpack.c.bf16 %v35_v6, %v34_v5  ;;  %v1010_v11 = vld [vmem:[%s1375_s3 + $0x38] sm:$0xff]   ;;  %v1011_v12 = vld [vmem:[%s1375_s3 + $0x70] sm:$0xff]   ;;  %v1013_v14 = vld [vmem:[%s1375_s3 + $0x68] sm:$0xff]   ;;  %v51_v15 = vpack.c.bf16 %v37_v10, %v36_v9 }
   0x5   :  { %858 = vmatpush3.bf16.msra.mxu1 %v1010_v11  ;;  %v1012_v13 = vld [vmem:[%s1375_s3 + $0x30] sm:$0xff]   ;;  %v1014_v16 = vld [vmem:[%s1375_s3 + $0x28] sm:$0xff]   ;;  %v1015_v17 = vld [vmem:[%s1375_s3 + $0x60] sm:$0xff]  }
   0x6   :  { %859 = vmatprep.subr.bf16.mxu1 %v1011_v12  ;;  %v38_v18 = vld [vmem:[%s1372_s0 + $0x20] sm:$0xff]  ;;  %v39_v19 = vld [vmem:[%s1372_s0 + $0x28] sm:$0xff]  ;;  %v1017_v21 = vld [vmem:[%s1375_s3 + $0x58] sm:$0xff]  }
   0x7   :  { %134 = vmatpush1.bf16.msra.mxu0 %v1008_v4  ;;  %v1016_v20 = vld [vmem:[%s1375_s3 + $0x20] sm:$0xff]   ;;  %v1018_v22 = vld [vmem:[%s1375_s3 + $0x18] sm:$0xff]   ;;  %v52_v23 = vpack.c.bf16 %v39_v19, %v38_v18  ;;  %v40_v24 = vld [vmem:[%s1372_s0 + $0x30] sm:$0xff] }
   0x8   :  { %v41_v25 = vld [vmem:[%s1372_s0 + $0x38] sm:$0xff] }
   0x9   :  { %860 = vmatpush3.bf16.msra.mxu1 %v1012_v13 }
   0xa   :  { %822 = vmatmul.mubr.msk.bf16.vlgmr.msra.gmra.mxu0 %vm94_vm0, %v50_v7  ;;  %861 = vmatprep.subr.bf16.mxu1 %v1013_v14 }
   0xb   :  { %161 = vmatprep.mubr.bf16.mxu0 %v1055_v2 }
   0xd   :  { %862 = vmatpush3.bf16.msra.mxu1 %v1014_v16 }
   0xe   :  { %863 = vmatprep.subr.bf16.mxu1 %v1015_v17 }
  0x11   :  { %864 = vmatpush3.bf16.msra.mxu1 %v1016_v20 }
  0x12   :  { %823 = vmatmul.mubr.msk.bf16.gmra.mxu0 %vm94_vm0, %v51_v15  ;;  %865 = vmatprep.subr.bf16.mxu1 %v1017_v21 }
  0x13   :  { %171 = vmatprep.mubr.bf16.mxu0 %v1055_v2 }
  0x15   :  { %866 = vmatpush3.bf16.msra.mxu1 %v1018_v22 }
  0x1a   :  { %824 = vmatmul.mubr.msk.bf16.gmra.mxu0 %vm94_vm0, %v52_v23 }
  0x1b   :  { %181 = vmatprep.mubr.bf16.mxu0 %v1055_v2 }
  0x1c   :  { %14 = vsyncpa [#allocation3], 0  ;;  %v53_v26 = vpack.c.bf16 %v41_v25, %v40_v24  ;;  %v42_v27 = vld [vmem:[%s1372_s0 + $0x40] sm:$0xff]  ;;  %v43_v28 = vld [vmem:[%s1372_s0 + $0x48] sm:$0xff]  ;;  %v64_v48 = vlaneseq  ;;  %vm1057_vm1 = vmmov 0   ;;  %vm735_vm2 = vcmask 523264  }
  0x1d   :  { %v54_v29 = vpack.c.bf16 %v43_v28, %v42_v27  ;;  %v44_v30 = vld [vmem:[%s1372_s0 + $0x50] sm:$0xff]  ;;  %v45_v31 = vld [vmem:[%s1372_s0 + $0x58] sm:$0xff]  ;;  %v46_v33 = vld [vmem:[%s1372_s0 + $0x60] sm:$0xff]  ;;  %s1058_s11 = smov [#allocation2]  }
  0x1e   :  { %v55_v32 = vpack.c.bf16 %v45_v31, %v44_v30  ;;  %v47_v34 = vld [vmem:[%s1372_s0 + $0x68] sm:$0xff]  ;;  %v48_v36 = vld [vmem:[%s1372_s0 + $0x70] sm:$0xff]  ;;  %v49_v37 = vld [vmem:[%s1372_s0 + $0x78] sm:$0xff]  ;;  %v65_v49 = vshrl.u32 %v64_v48, 7  ;;  %s810_s12 = sshll.u32 %s1058_s11, 4  ;;  %s811_s12 = int_to_ptr.vmem [resolvable:$true] %s810_s12 }
  0x1f   :  { %v56_v35 = vpack.c.bf16 %v47_v34, %v46_v33  ;;  %v57_v38 = vpack.c.bf16 %v49_v37, %v48_v36  ;;  %v1019_v39 = vld [vmem:[%s1375_s3 + $0x50] sm:$0xff]   ;;  %v1021_v41 = vld [vmem:[%s1375_s3 + $0x48] sm:$0xff]   ;;  %v1023_v43 = vld [vmem:[%s1375_s3 + $0x40] sm:$0xff]   ;;  %s1033_s13 = scalar_lea.vmem %s811_s12, 128  ;;  %p1038_p1 = scmp.lt.s32.totalorder %s811_s12, %s811_s12 }
  0x20   :  { %v1020_v40 = vld [vmem:[%s1375_s3 + $0x10] sm:$0xff]   ;;  %867 = vmatprep.subr.bf16.mxu1 %v1019_v39  ;;  %v1022_v42 = vld [vmem:[%s1375_s3 + $0x8] sm:$0xff]   ;;  %v1024_v44 = vld [vmem:[%s1375_s3] sm:$0xff]   ;;  %v70_v50 = vsub.s32 1, %v65_v49  ;;  %v66_v51 = vsub.s32 0, %v65_v49  ;;  %p1034_p0 = scmp.ne.s32.totalorder %s811_s12, %s1033_s13  ;;  %p1039_p2 = scmp.lt.s32.totalorder %s1033_s13, %s1033_s13 }
  0x21   :  { %868 = vmatpush3.bf16.msra.mxu1 %v1020_v40  ;;  %v1025_v45 = vld [vmem:[%s1377_s5 + $0x38] sm:$0xff]   ;;  %v1026_v46 = vld [vmem:[%s1377_s5 + $0x30] sm:$0xff]   ;;  %v1027_v47 = vld [vmem:[%s1377_s5 + $0x28] sm:$0xff]  }
  0x22   :  { %825 = vmatmul.mubr.msk.bf16.gmra.mxu0 %vm94_vm0, %v53_v26  ;;  %869 = vmatprep.subr.bf16.mxu1 %v1021_v41  ;;  %v62_v52 = vld [vmem:[%s1374_s2] sm:$0x3]  ;;  %p1040_p3 = por %p1039_p2, %p1038_p1 }
  0x23   :  { %191 = vmatprep.mubr.bf16.mxu0 %v1055_v2  ;;  %946 = vmatprep.subr.bf16.mxu0 %v1025_v45  ;;  %v1246_v54 = vrot.slane %v62_v52, %v70_v50  ;;  %v1248_v55 = vrot.slane %v62_v52, %v66_v51 }
  0x24   :  { %947 = vmatpush3.bf16.msra.mxu0 %v1025_v45  ;;  %p1041_p4 = pnand %p1040_p3, %p1034_p0 }
  0x25   :  { %870 = vmatpush3.bf16.msra.mxu1 %v1022_v42  ;;  %948 = vmatprep.subr.bf16.mxu0 %v1026_v46 }
  0x26   :  { %871 = vmatprep.subr.bf16.mxu1 %v1023_v43 }
  0x28   :  { %949 = vmatpush3.bf16.msra.mxu0 %v1026_v46 }
  0x29   :  { %872 = vmatpush3.bf16.msra.mxu1 %v1024_v44  ;;  %950 = vmatprep.subr.bf16.mxu0 %v1027_v47 }
  0x2a   :  { %826 = vmatmul.mubr.msk.bf16.gmra.mxu0 %vm94_vm0, %v54_v29 }
  0x2b   :  { %201 = vmatprep.mubr.bf16.mxu0 %v1055_v2 }
  0x2c   :  { %951 = vmatpush3.bf16.msra.mxu0 %v1027_v47 }
  0x32   :  { %827 = vmatmul.mubr.msk.bf16.gmra.mxu0 %vm94_vm0, %v55_v32 }
  0x33   :  { %211 = vmatprep.mubr.bf16.mxu0 %v1055_v2 }
  0x3a   :  { %828 = vmatmul.mubr.msk.bf16.gmra.mxu0 %vm94_vm0, %v56_v35 }
  0x3b   :  { %221 = vmatprep.mubr.bf16.mxu0 %v1055_v2 }
  0x42   :  { %829 = vmatmul.mubr.msk.bf16.gmra.mxu0 %vm94_vm0, %v57_v38 }
  0xca   :  { %v153_v53 = vpop.f32.mrf.mxu0 }
  0xcb   :  { %v154_v60 = vadd.f32 %v153_v53, %v1248_v55 }
  0xcc   :  { %v155_v56 = vpop.f32.mrf.mxu0 }
  0xcd   :  { %v156_v58 = vadd.f32 %v155_v56, %v1246_v54  ;;  %v232_v3 = vmax.f32 %v154_v60, 0.0 }
  0xce   :  { %v157_v57 = vpop.f32.mrf.mxu0 }
  0xcf   :  { %v158_v59 = vadd.f32 %v157_v57, %v1248_v55  ;;  %v233_v1 = vmax.f32 %v156_v58, 0.0 }
  0xd0   :  { %v159_v61 = vpop.f32.mrf.mxu0 }
  0xd1   :  { %v160_v62 = vadd.f32 %v159_v61, %v1246_v54  ;;  %v234_v63 = vmax.f32 %v158_v59, 0.0 }
  0xd2   :  { %v163_v0 = vpop.f32.mrf.mxu0 }
  0xd3   :  { %v235_v2 = vmax.f32 %v160_v62, 0.0  ;;  %v264_v6 = vpack.c.bf16 %v234_v63, %v232_v3  ;;  %v164_v10 = vadd.f32 %v163_v0, %v1248_v55 }
  0xd4   :  { %v165_v4 = vpop.f32.mrf.mxu0 }
  0xd5   :  { %v265_v5 = vpack.c.bf16 %v235_v2, %v233_v1  ;;  %v166_v8 = vadd.f32 %v165_v4, %v1246_v54  ;;  %v236_v17 = vmax.f32 %v164_v10, 0.0 }
  0xd6   :  { %v167_v7 = vpop.f32.mrf.mxu0 }
  0xd7   :  { %v168_v9 = vadd.f32 %v167_v7, %v1248_v55  ;;  %447 = vmatprep.mubr.bf16.mxu1 %v265_v5  ;;  %v237_v15 = vmax.f32 %v166_v8, 0.0 }
  0xd8   :  { %v169_v11 = vpop.f32.mrf.mxu0  ;;  %448 = vmatmul.mubr.bf16.vlgmr.msra.gmra.mxu1 %v264_v6 }
  0xd9   :  { %v170_v12 = vadd.f32 %v169_v11, %v1246_v54  ;;  %v238_v13 = vmax.f32 %v168_v9, 0.0 }
  0xda   :  { %v173_v14 = vpop.f32.mrf.mxu0 }
  0xdb   :  { %v239_v16 = vmax.f32 %v170_v12, 0.0  ;;  %v266_v20 = vpack.c.bf16 %v238_v13, %v236_v17  ;;  %v174_v24 = vadd.f32 %v173_v14, %v1248_v55 }
  0xdc   :  { %v175_v18 = vpop.f32.mrf.mxu0 }
  0xdd   :  { %v267_v19 = vpack.c.bf16 %v239_v16, %v237_v15  ;;  %v176_v22 = vadd.f32 %v175_v18, %v1246_v54  ;;  %v240_v31 = vmax.f32 %v174_v24, 0.0 }
  0xde   :  { %v177_v21 = vpop.f32.mrf.mxu0 }
  0xdf   :  { %v178_v23 = vadd.f32 %v177_v21, %v1248_v55  ;;  %455 = vmatprep.mubr.bf16.mxu1 %v267_v19  ;;  %v241_v29 = vmax.f32 %v176_v22, 0.0 }
  0xe0   :  { %v179_v25 = vpop.f32.mrf.mxu0  ;;  %456 = vmatmul.mubr.bf16.gmra.mxu1 %v266_v20 }
  0xe1   :  { %v180_v26 = vadd.f32 %v179_v25, %v1246_v54  ;;  %v242_v27 = vmax.f32 %v178_v23, 0.0 }
  0xe2   :  { %v183_v28 = vpop.f32.mrf.mxu0 }
  0xe3   :  { %v243_v30 = vmax.f32 %v180_v26, 0.0  ;;  %v268_v34 = vpack.c.bf16 %v242_v27, %v240_v31  ;;  %v184_v38 = vadd.f32 %v183_v28, %v1248_v55 }
  0xe4   :  { %v185_v32 = vpop.f32.mrf.mxu0 }
  0xe5   :  { %v269_v33 = vpack.c.bf16 %v243_v30, %v241_v29  ;;  %v186_v36 = vadd.f32 %v185_v32, %v1246_v54  ;;  %v244_v45 = vmax.f32 %v184_v38, 0.0 }
  0xe6   :  { %v187_v35 = vpop.f32.mrf.mxu0 }
  0xe7   :  { %v188_v37 = vadd.f32 %v187_v35, %v1248_v55  ;;  %463 = vmatprep.mubr.bf16.mxu1 %v269_v33  ;;  %v245_v43 = vmax.f32 %v186_v36, 0.0 }
  0xe8   :  { %v189_v39 = vpop.f32.mrf.mxu0  ;;  %464 = vmatmul.mubr.bf16.gmra.mxu1 %v268_v34 }
  0xe9   :  { %v190_v40 = vadd.f32 %v189_v39, %v1246_v54  ;;  %v246_v41 = vmax.f32 %v188_v37, 0.0 }
  0xea   :  { %v193_v42 = vpop.f32.mrf.mxu0 }
  0xeb   :  { %v247_v44 = vmax.f32 %v190_v40, 0.0  ;;  %v270_v48 = vpack.c.bf16 %v246_v41, %v244_v45  ;;  %v194_v52 = vadd.f32 %v193_v42, %v1248_v55  ;;  %v1028_v41 = vld [vmem:[%s1377_s5 + $0x20] sm:$0xff]   ;;  %v1031_v42 = vld [vmem:[%s1377_s5 + $0x8] sm:$0xff]  }
  0xec   :  { %v195_v46 = vpop.f32.mrf.mxu0  ;;  %952 = vmatprep.subr.bf16.mxu0 %v1028_v41 }
  0xed   :  { %v271_v47 = vpack.c.bf16 %v247_v44, %v245_v43  ;;  %v196_v50 = vadd.f32 %v195_v46, %v1246_v54  ;;  %v248_v61 = vmax.f32 %v194_v52, 0.0  ;;  %953 = vmatpush3.bf16.msra.mxu0 %v1028_v41  ;;  %v1032_v43 = vld [vmem:[%s1377_s5] sm:$0xff]  }
  0xee   :  { %v197_v49 = vpop.f32.mrf.mxu0 }
  0xef   :  { %v198_v51 = vadd.f32 %v197_v49, %v1248_v55  ;;  %471 = vmatprep.mubr.bf16.mxu1 %v271_v47  ;;  %v249_v59 = vmax.f32 %v196_v50, 0.0  ;;  %v1300_v47 = vld [vmem:[%s1376_s4] ss:$0 sm:$0xff] }
  0xf0   :  { %v199_v53 = vpop.f32.mrf.mxu0  ;;  %472 = vmatmul.mubr.bf16.gmra.mxu1 %v270_v48 }
  0xf1   :  { %v200_v56 = vadd.f32 %v199_v53, %v1246_v54  ;;  %v250_v57 = vmax.f32 %v198_v51, 0.0 }
  0xf2   :  { %v203_v58 = vpop.f32.mrf.mxu0 }
  0xf3   :  { %v251_v60 = vmax.f32 %v200_v56, 0.0  ;;  %v272_v0 = vpack.c.bf16 %v250_v57, %v248_v61  ;;  %v204_v4 = vadd.f32 %v203_v58, %v1248_v55 }
  0xf4   :  { %v205_v62 = vpop.f32.mrf.mxu0 }
  0xf5   :  { %v273_v63 = vpack.c.bf16 %v251_v60, %v249_v59  ;;  %v206_v2 = vadd.f32 %v205_v62, %v1246_v54  ;;  %v252_v11 = vmax.f32 %v204_v4, 0.0 }
  0xf6   :  { %v207_v1 = vpop.f32.mrf.mxu0 }
  0xf7   :  { %v208_v3 = vadd.f32 %v207_v1, %v1248_v55  ;;  %479 = vmatprep.mubr.bf16.mxu1 %v273_v63  ;;  %v253_v9 = vmax.f32 %v206_v2, 0.0 }
  0xf8   :  { %v209_v5 = vpop.f32.mrf.mxu0  ;;  %480 = vmatmul.mubr.bf16.gmra.mxu1 %v272_v0 }
  0xf9   :  { %v210_v6 = vadd.f32 %v209_v5, %v1246_v54  ;;  %v254_v7 = vmax.f32 %v208_v3, 0.0 }
  0xfa   :  { %v213_v8 = vpop.f32.mrf.mxu0 }
  0xfb   :  { %v255_v10 = vmax.f32 %v210_v6, 0.0  ;;  %v274_v14 = vpack.c.bf16 %v254_v7, %v252_v11  ;;  %v214_v18 = vadd.f32 %v213_v8, %v1248_v55 }
  0xfc   :  { %v215_v12 = vpop.f32.mrf.mxu0 }
  0xfd   :  { %v275_v13 = vpack.c.bf16 %v255_v10, %v253_v9  ;;  %v216_v16 = vadd.f32 %v215_v12, %v1246_v54  ;;  %v256_v25 = vmax.f32 %v214_v18, 0.0 }
  0xfe   :  { %v217_v15 = vpop.f32.mrf.mxu0 }
  0xff   :  { %v218_v17 = vadd.f32 %v217_v15, %v1248_v55  ;;  %487 = vmatprep.mubr.bf16.mxu1 %v275_v13  ;;  %v257_v23 = vmax.f32 %v216_v16, 0.0 }
 0x100   :  { %v219_v19 = vpop.f32.mrf.mxu0  ;;  %488 = vmatmul.mubr.bf16.gmra.mxu1 %v274_v14 }
 0x101   :  { %v220_v20 = vadd.f32 %v219_v19, %v1246_v54  ;;  %v258_v21 = vmax.f32 %v218_v17, 0.0 }
 0x102   :  { %v223_v22 = vpop.f32.mrf.mxu0 }
 0x103   :  { %v259_v24 = vmax.f32 %v220_v20, 0.0  ;;  %v276_v28 = vpack.c.bf16 %v258_v21, %v256_v25  ;;  %v224_v32 = vadd.f32 %v223_v22, %v1248_v55 }
 0x104   :  { %v225_v26 = vpop.f32.mrf.mxu0 }
 0x105   :  { %v277_v27 = vpack.c.bf16 %v259_v24, %v257_v23  ;;  %v226_v30 = vadd.f32 %v225_v26, %v1246_v54  ;;  %v260_v38 = vmax.f32 %v224_v32, 0.0 }
 0x106   :  { %v227_v29 = vpop.f32.mrf.mxu0 }
 0x107   :  { %v228_v31 = vadd.f32 %v227_v29, %v1248_v55  ;;  %495 = vmatprep.mubr.bf16.mxu1 %v277_v27  ;;  %v261_v36 = vmax.f32 %v226_v30, 0.0  ;;  %v1029_v55 = vld [vmem:[%s1377_s5 + $0x18] sm:$0xff]  }
 0x108   :  { %v229_v33 = vpop.f32.mrf.mxu0  ;;  %496 = vmatmul.mubr.bf16.gmra.mxu1 %v276_v28  ;;  %954 = vmatprep.subr.bf16.mxu0 %v1029_v55 }
 0x109   :  { %v230_v34 = vadd.f32 %v229_v33, %v1246_v54  ;;  %v262_v35 = vmax.f32 %v228_v31, 0.0  ;;  %955 = vmatpush3.bf16.msra.mxu0 %v1029_v55  ;;  %v1030_v54 = vld [vmem:[%s1377_s5 + $0x10] sm:$0xff]  }
 0x10a   :  { %956 = vmatprep.subr.bf16.mxu0 %v1030_v54 }
 0x10b   :  { %v263_v37 = vmax.f32 %v230_v34, 0.0  ;;  %v278_v40 = vpack.c.bf16 %v262_v35, %v260_v38 }
 0x10d   :  { %v279_v39 = vpack.c.bf16 %v263_v37, %v261_v36  ;;  %957 = vmatpush3.bf16.msra.mxu0 %v1030_v54 }
 0x10e   :  { %958 = vmatprep.subr.bf16.mxu0 %v1031_v42 }
 0x10f   :  { %503 = vmatprep.mubr.bf16.mxu1 %v279_v39 }
 0x110   :  { %504 = vmatmul.mubr.bf16.gmra.mxu1 %v278_v40 }
 0x111   :  { %959 = vmatpush3.bf16.msra.mxu0 %v1031_v42 }
 0x112   :  { %960 = vmatprep.subr.bf16.mxu0 %v1032_v43 }
 0x115   :  { %961 = vmatpush3.bf16.msra.mxu0 %v1032_v43 }
 0x198   :  { %v873_v44 = vpop.f32.mrf.mxu1 }
 0x19a   :  { %v874_v45 = vpop.f32.mrf.mxu1 }
 0x19b   :  { %v875_v46 = vadd.f32 %v874_v45, %v873_v44 }
 0x19c   :  { %v876_v48 = vpop.f32.mrf.mxu1 }
 0x19d   :  { %v450_v50 = vadd.f32 %v875_v46, %v1300_v47 }
 0x19e   :  { %v877_v49 = vpop.f32.mrf.mxu1 }
 0x19f   :  { %v878_v51 = vadd.f32 %v877_v49, %v876_v48  ;;  %v512_v57 = vmax.f32 %v450_v50, 0.0 }
 0x1a0   :  { %v879_v52 = vpop.f32.mrf.mxu1 }
 0x1a1   :  { %v453_v53 = vadd.f32 %v878_v51, %v1300_v47 }
 0x1a2   :  { %v880_v56 = vpop.f32.mrf.mxu1 }
 0x1a3   :  { %v513_v58 = vmax.f32 %v453_v53, 0.0  ;;  %v881_v59 = vadd.f32 %v880_v56, %v879_v52 }
 0x1a4   :  { %v882_v60 = vpop.f32.mrf.mxu1 }
 0x1a5   :  { %v528_v61 = vpack.c.bf16 %v513_v58, %v512_v57  ;;  %v458_v63 = vadd.f32 %v881_v59, %v1300_v47 }
 0x1a6   :  { %v883_v62 = vpop.f32.mrf.mxu1 }
 0x1a7   :  { %v884_v0 = vadd.f32 %v883_v62, %v882_v60  ;;  %962 = vmatprep.mubr.bf16.mxu0 %v528_v61  ;;  %v514_v4 = vmax.f32 %v458_v63, 0.0 }
 0x1a8   :  { %v885_v1 = vpop.f32.mrf.mxu1 }
 0x1a9   :  { %v461_v2 = vadd.f32 %v884_v0, %v1300_v47 }
 0x1aa   :  { %v886_v3 = vpop.f32.mrf.mxu1 }
 0x1ab   :  { %v515_v5 = vmax.f32 %v461_v2, 0.0  ;;  %v887_v6 = vadd.f32 %v886_v3, %v885_v1 }
 0x1ac   :  { %v888_v7 = vpop.f32.mrf.mxu1 }
 0x1ad   :  { %v529_v8 = vpack.c.bf16 %v515_v5, %v514_v4  ;;  %v466_v10 = vadd.f32 %v887_v6, %v1300_v47 }
 0x1ae   :  { %v889_v9 = vpop.f32.mrf.mxu1 }
 0x1af   :  { %v890_v11 = vadd.f32 %v889_v9, %v888_v7  ;;  %963 = vmatmul.mubr.bf16.vlgmr.msra.gmra.mxu0 %v529_v8  ;;  %v516_v15 = vmax.f32 %v466_v10, 0.0  ;;  %v1056_v8 = vmov 0.0   ;;  %v729_v9 = vld [vmem:[%s1380_s8] sm:$0xff] }
 0x1b0   :  { %v891_v12 = vpop.f32.mrf.mxu1  ;;  %978 = vmatprep.subr.bf16.mxu1 %v1056_v8  ;;  %994 = vmatprep.mubr.msk.bf16.mxu1 %vm1057_vm1, %v1056_v8 }
 0x1b1   :  { %v469_v13 = vadd.f32 %v890_v11, %v1300_v47  ;;  %732 = vperm.xlu0 %1002, %v729_v9  }
 0x1b2   :  { %v892_v14 = vpop.f32.mrf.mxu1 }
 0x1b3   :  { %v517_v16 = vmax.f32 %v469_v13, 0.0  ;;  %v893_v17 = vadd.f32 %v892_v14, %v891_v12 }
 0x1b4   :  { %v894_v18 = vpop.f32.mrf.mxu1 }
 0x1b5   :  { %v530_v19 = vpack.c.bf16 %v517_v16, %v516_v15  ;;  %v474_v21 = vadd.f32 %v893_v17, %v1300_v47 }
 0x1b6   :  { %v895_v20 = vpop.f32.mrf.mxu1 }
 0x1b7   :  { %v896_v22 = vadd.f32 %v895_v20, %v894_v18  ;;  %966 = vmatprep.mubr.bf16.mxu0 %v530_v19  ;;  %v518_v26 = vmax.f32 %v474_v21, 0.0 }
 0x1b8   :  { %v897_v23 = vpop.f32.mrf.mxu1 }
 0x1b9   :  { %v477_v24 = vadd.f32 %v896_v22, %v1300_v47 }
 0x1ba   :  { %v898_v25 = vpop.f32.mrf.mxu1 }
 0x1bb   :  { %v519_v27 = vmax.f32 %v477_v24, 0.0  ;;  %v899_v28 = vadd.f32 %v898_v25, %v897_v23 }
 0x1bc   :  { %v900_v29 = vpop.f32.mrf.mxu1 }
 0x1bd   :  { %v531_v30 = vpack.c.bf16 %v519_v27, %v518_v26  ;;  %v482_v32 = vadd.f32 %v899_v28, %v1300_v47 }
 0x1be   :  { %v901_v31 = vpop.f32.mrf.mxu1 }
 0x1bf   :  { %v902_v33 = vadd.f32 %v901_v31, %v900_v29  ;;  %967 = vmatmul.mubr.bf16.gmra.mxu0 %v531_v30  ;;  %v520_v37 = vmax.f32 %v482_v32, 0.0 }
 0x1c0   :  { %v903_v34 = vpop.f32.mrf.mxu1 }
 0x1c1   :  { %v485_v35 = vadd.f32 %v902_v33, %v1300_v47 }
 0x1c2   :  { %v904_v36 = vpop.f32.mrf.mxu1 }
 0x1c3   :  { %v521_v38 = vmax.f32 %v485_v35, 0.0  ;;  %v905_v39 = vadd.f32 %v904_v36, %v903_v34 }
 0x1c4   :  { %v906_v40 = vpop.f32.mrf.mxu1 }
 0x1c5   :  { %v532_v41 = vpack.c.bf16 %v521_v38, %v520_v37  ;;  %v490_v54 = vadd.f32 %v905_v39, %v1300_v47 }
 0x1c6   :  { %v907_v55 = vpop.f32.mrf.mxu1 }
 0x1c7   :  { %v908_v42 = vadd.f32 %v907_v55, %v906_v40  ;;  %970 = vmatprep.mubr.bf16.mxu0 %v532_v41  ;;  %v522_v46 = vmax.f32 %v490_v54, 0.0 }
 0x1c8   :  { %v909_v43 = vpop.f32.mrf.mxu1 }
 0x1c9   :  { %v493_v44 = vadd.f32 %v908_v42, %v1300_v47 }
 0x1ca   :  { %v910_v45 = vpop.f32.mrf.mxu1 }
 0x1cb   :  { %v523_v48 = vmax.f32 %v493_v44, 0.0  ;;  %v911_v49 = vadd.f32 %v910_v45, %v909_v43 }
 0x1cc   :  { %v912_v50 = vpop.f32.mrf.mxu1 }
 0x1cd   :  { %v533_v51 = vpack.c.bf16 %v523_v48, %v522_v46  ;;  %v498_v53 = vadd.f32 %v911_v49, %v1300_v47 }
 0x1ce   :  { %v913_v52 = vpop.f32.mrf.mxu1 }
 0x1cf   :  { %v914_v56 = vadd.f32 %v913_v52, %v912_v50  ;;  %971 = vmatmul.mubr.bf16.gmra.mxu0 %v533_v51  ;;  %v524_v60 = vmax.f32 %v498_v53, 0.0 }
 0x1d0   :  { %v915_v57 = vpop.f32.mrf.mxu1 }
 0x1d1   :  { %v501_v58 = vadd.f32 %v914_v56, %v1300_v47 }
 0x1d2   :  { %v916_v59 = vpop.f32.mrf.mxu1 }
 0x1d3   :  { %v525_v61 = vmax.f32 %v501_v58, 0.0  ;;  %v917_v62 = vadd.f32 %v916_v59, %v915_v57 }
 0x1d4   :  { %v918_v63 = vpop.f32.mrf.mxu1 }
 0x1d5   :  { %v534_v0 = vpack.c.bf16 %v525_v61, %v524_v60  ;;  %v506_v2 = vadd.f32 %v917_v62, %v1300_v47 }
 0x1d6   :  { %v919_v1 = vpop.f32.mrf.mxu1 }
 0x1d7   :  { %v920_v3 = vadd.f32 %v919_v1, %v918_v63  ;;  %974 = vmatprep.mubr.bf16.mxu0 %v534_v0  ;;  %v526_v5 = vmax.f32 %v506_v2, 0.0 }
 0x1d9   :  { %v509_v4 = vadd.f32 %v920_v3, %v1300_v47  ;;  %v1326_v47 = vld [vmem:[%s1378_s6] ss:$0 sm:$0xff] }
 0x1db   :  { %v527_v6 = vmax.f32 %v509_v4, 0.0 }
 0x1dd   :  { %v535_v7 = vpack.c.bf16 %v527_v6, %v526_v5 }
 0x1df   :  { %975 = vmatmul.mubr.bf16.gmra.mxu0 %v535_v7 }
 0x26f   :  { %v964_v10 = vpop.f32.mrf.mxu0 }
 0x270   :  { %v650_v12 = vadd.f32 %v964_v10, %v1326_v47 }
 0x271   :  { %v641_v11 = vpop.f32.mrf.mxu0 }
 0x272   :  { %v642_v14 = vadd.f32 %v1326_v47, %v641_v11  ;;  %v706_v17 = vmax.f32 %v650_v12, 0.0  ;;  %v728_v11 = vld [vmem:[%s1379_s7] sm:$0xf]  ;;  %v733_v12 = vpop.permute.xlu0 %732 }
 0x273   :  { %v965_v13 = vpop.f32.mrf.mxu0 }
 0x274   :  { %v653_v15 = vadd.f32 %v965_v13, %v1326_v47  ;;  %v704_v20 = vmax.f32 %v642_v14, 0.0 }
 0x275   :  { %v644_v16 = vpop.f32.mrf.mxu0 }
 0x276   :  { %v707_v18 = vmax.f32 %v653_v15, 0.0  ;;  %v645_v19 = vadd.f32 %v1326_v47, %v644_v16 }
 0x278   :  { %v1332_v21 = vpack.c.bf16 %v707_v18, %v706_v17  ;;  %v705_v22 = vmax.f32 %v645_v19, 0.0 }
 0x27a   :  { %v1334_v23 = vpack.c.bf16 %v705_v22, %v704_v20  ;;  %v743_v10 = vsel %vm735_vm2, %v1332_v21, 0 }
 0x27f   :  { %v968_v24 = vpop.f32.mrf.mxu0 }
 0x280   :  { %v666_v61 = vadd.f32 %v968_v24, %v1326_v47 }
 0x281   :  { %v657_v25 = vpop.f32.mrf.mxu0 }
 0x282   :  { %v710_v0 = vmax.f32 %v666_v61, 0.0  ;;  %v658_v3 = vadd.f32 %v1326_v47, %v657_v25 }
 0x283   :  { %v969_v26 = vpop.f32.mrf.mxu0 }
 0x284   :  { %v669_v59 = vadd.f32 %v969_v26, %v1326_v47  ;;  %v708_v6 = vmax.f32 %v658_v3, 0.0 }
 0x285   :  { %v660_v27 = vpop.f32.mrf.mxu0 }
 0x286   :  { %v711_v62 = vmax.f32 %v669_v59, 0.0  ;;  %v661_v2 = vadd.f32 %v1326_v47, %v660_v27 }
 0x288   :  { %v723_v1 = vpack.c.bf16 %v711_v62, %v710_v0  ;;  %v709_v4 = vmax.f32 %v661_v2, 0.0 }
 0x28a   :  { %v749_v5 = vsel %vm735_vm2, %v723_v1, 0  ;;  %v722_v7 = vpack.c.bf16 %v709_v4, %v708_v6 }
 0x28c   :  { %v746_v9 = vsel %vm735_vm2, %v722_v7, 0 }
 0x28f   :  { %v972_v28 = vpop.f32.mrf.mxu0 }
 0x290   :  { %v682_v46 = vadd.f32 %v972_v28, %v1326_v47 }
 0x291   :  { %v673_v29 = vpop.f32.mrf.mxu0 }
 0x292   :  { %v714_v50 = vmax.f32 %v682_v46, 0.0  ;;  %v674_v53 = vadd.f32 %v1326_v47, %v673_v29 }
 0x293   :  { %v973_v30 = vpop.f32.mrf.mxu0 }
 0x294   :  { %v685_v44 = vadd.f32 %v973_v30, %v1326_v47  ;;  %v712_v58 = vmax.f32 %v674_v53, 0.0 }
 0x295   :  { %v676_v31 = vpop.f32.mrf.mxu0 }
 0x296   :  { %v715_v48 = vmax.f32 %v685_v44, 0.0  ;;  %v677_v52 = vadd.f32 %v1326_v47, %v676_v31 }
 0x298   :  { %v725_v51 = vpack.c.bf16 %v715_v48, %v714_v50  ;;  %v713_v56 = vmax.f32 %v677_v52, 0.0 }
 0x29a   :  { %v755_v57 = vsel %vm735_vm2, %v725_v51, 0  ;;  %v724_v60 = vpack.c.bf16 %v713_v56, %v712_v58 }
 0x29c   :  { %v752_v63 = vsel %vm735_vm2, %v724_v60, 0 }
 0x29f   :  { %v976_v32 = vpop.f32.mrf.mxu0 }
 0x2a0   :  { %v698_v34 = vadd.f32 %v976_v32, %v1326_v47 }
 0x2a1   :  { %v689_v33 = vpop.f32.mrf.mxu0 }
 0x2a2   :  { %v718_v38 = vmax.f32 %v698_v34, 0.0  ;;  %v690_v41 = vadd.f32 %v1326_v47, %v689_v33 }
 0x2a3   :  { %v977_v35 = vpop.f32.mrf.mxu0 }
 0x2a4   :  { %v701_v36 = vadd.f32 %v977_v35, %v1326_v47  ;;  %v716_v43 = vmax.f32 %v690_v41, 0.0 }
 0x2a5   :  { %v692_v37 = vpop.f32.mrf.mxu0 }
 0x2a6   :  { %v719_v39 = vmax.f32 %v701_v36, 0.0  ;;  %v693_v40 = vadd.f32 %v1326_v47, %v692_v37  ;;  %v740_v47 = vsel %vm735_vm2, %v1334_v23, 0 }
 0x2a8   :  { %v727_v55 = vpack.c.bf16 %v719_v39, %v718_v38  ;;  %v717_v54 = vmax.f32 %v693_v40, 0.0 }
 0x2aa   :  { %v761_v42 = vsel %vm735_vm2, %v727_v55, 0  ;;  %v726_v45 = vpack.c.bf16 %v717_v54, %v716_v43 }
 0x2ab   :  { %979 = vmatpush3.bf16.xpose.msra.mxu1 %v761_v42 }
 0x2ac   :  { %980 = vmatprep.subr.bf16.mxu1 %v1056_v8  ;;  %v758_v49 = vsel %vm735_vm2, %v726_v45, 0 }
 0x2b3   :  { %981 = vmatpush3.bf16.xpose.msra.mxu1 %v758_v49 }
 0x2b4   :  { %982 = vmatprep.subr.bf16.mxu1 %v1056_v8 }
 0x2bb   :  { %983 = vmatpush3.bf16.xpose.msra.mxu1 %v755_v57 }
 0x2bc   :  { %984 = vmatprep.subr.bf16.mxu1 %v1056_v8 }
 0x2c3   :  { %985 = vmatpush3.bf16.xpose.msra.mxu1 %v752_v63 }
 0x2c4   :  { %986 = vmatprep.subr.bf16.mxu1 %v1056_v8 }
 0x2cb   :  { %987 = vmatpush3.bf16.xpose.msra.mxu1 %v749_v5 }
 0x2cc   :  { %988 = vmatprep.subr.bf16.mxu1 %v1056_v8 }
 0x2d3   :  { %989 = vmatpush3.bf16.xpose.msra.mxu1 %v746_v9 }
 0x2d4   :  { %990 = vmatprep.subr.bf16.mxu1 %v1056_v8 }
 0x2db   :  { %991 = vmatpush3.bf16.xpose.msra.mxu1 %v743_v10 }
 0x2dc   :  { %992 = vmatprep.subr.bf16.mxu1 %v1056_v8 }
 0x2e3   :  { %993 = vmatpush3.bf16.xpose.msra.mxu1 %v740_v47 }
 0x2ea   :  { %995 = vmatmul.mubr.msk.bf16.vlgmr.msra.gmra.mxu1 %vm735_vm2, %v728_v11 }
 0x3aa   :  { %v797_v13 = vpop.f32.mrf.mxu1 }
 0x3ab   :  { %v798_v14 = vadd.f32 %v797_v13, %v733_v12 }
 0x3ac   :  { %v996_v15 = vpop.f32.mrf.mxu1 }
 0x3ad   :  { %803 = vst [vmem:[#allocation2] sm:$0xff] %v798_v14 }
 0x3ae   :  { %v800_v16 = vpop.f32.mrf.mxu1 }
 0x3af   :  { %1044 = shalt.err (!%p1041_p4)
}
 0x3b0   :  { %813 = dma.vmem_to_hbm [thread:$0]  %s811_s12, 128, %s1381_s9, [#allocation3]   ;;  %v997_v8 = vpop.f32.mrf.mxu1 }
 0x3b1   :  { %1053 = dma.done.wait [#allocation3], 128  }
 0x3b2   :  { %1054 = vsyncadd [#allocation3], 4294967168 }
 0x3b3   :  { %817 = vsyncpa [#allocation3], 1 }

</bundles_post_ra>
